<compile_context>
chip_gen: v6e
topology: v6e:2x2x1
jax: 0.10.0
libtpu: 0.0.40
codegen_flags: <defaults>
</compile_context>

<pallas_src>
import jax
import jax.numpy as jnp
from jax.experimental import pallas as pl
from jax.experimental.pallas import tpu as pltpu


def _scheduler_net_kernel(params_ref, x_ref, o_ref):
    # params_ref lives in SMEM: [w1, b1, w2, b2] (the 1x1-conv scalars).
    w1 = params_ref[0]
    b1 = params_ref[1]
    w2 = params_ref[2]
    b2 = params_ref[3]
    y = x_ref[...] * w1 + b1                      # conv1 (1x1, 1 -> 1 channel)
    y = jnp.maximum(y, 0.0)                       # F.relu
    o_ref[...] = (y * w2 + b2).astype(o_ref.dtype)  # conv2 (1x1, 1 -> 1 channel)


def _round_up(v, m):
    return -(-v // m) * m


def scheduler_test_net(x, w1, b1, w2, b2, *, target_tile_bytes=4 << 20):
    """x: float32 NCHW tensor with C == 1. Returns a same-shaped output."""
    orig_shape = x.shape
    N, C, H, W = orig_shape
    assert C == 1, "SchedulerTestNet uses single-channel 1x1 convs"
    assert x.dtype == jnp.float32, "kernel assumes float32 (PyTorch default)"
    # TODO(synk): add a (16,128)-tile path for bf16 inputs if ever needed.

    total = N * C * H * W

    # ---- Zero-copy 2D layout (no pad, no output slice) -------------------
    # Prefer a lane-dense last dim that divides `total` exactly; otherwise
    # keep (N*H, W): the block's last dim then equals the full array dim,
    # which satisfies the (8,128) block rule for any W.
    L = None
    for cand in (1024, 512, 256, 128):
        if total % cand == 0:
            L = cand
            break
    if L is not None:
        x2 = x.reshape(total // L, L)
    else:
        x2 = x.reshape(N * C * H, W)
        L = W
    rows = x2.shape[0]

    # ---- Row-tile selection ----------------------------------------------
    # Aim for ~target_tile_bytes per input tile, but keep >= ~4 grid steps on
    # mid/large inputs so v7x can split the grid across its two TensorCores.
    bytes_per_row = L * x2.dtype.itemsize
    r_target = max(8, (target_tile_bytes // bytes_per_row) // 8 * 8)
    if rows >= 32:
        r_split = max(8, _round_up(pl.cdiv(rows, 4), 8))
        R = min(r_target, r_split)
    elif rows >= 8:
        R = min(r_target, rows // 8 * 8)      # multiple of 8; last block ragged
    else:
        R = rows                              # tiny input: block == full dim
    grid = (pl.cdiv(rows, R),)

    params = jnp.asarray([w1, b1, w2, b2], dtype=jnp.float32)

    out2 = pl.pallas_call(
        _scheduler_net_kernel,
        out_shape=jax.ShapeDtypeStruct(x2.shape, x2.dtype),
        grid=grid,
        in_specs=[
            pl.BlockSpec(memory_space=pltpu.SMEM),        # scalar params
            pl.BlockSpec((R, L), lambda i: (i, 0)),       # input tile
        ],
        out_specs=pl.BlockSpec((R, L), lambda i: (i, 0)),
        compiler_params=pltpu.CompilerParams(
            dimension_semantics=("parallel",),
            vmem_limit_bytes=40 << 20,    # >= 4x tile bytes; v5e scoped default is 16 MiB
        ),
        cost_estimate=pl.CostEstimate(
            flops=5 * total,                              # 2 fma-pairs + relu per elem
            transcendentals=0,
            bytes_accessed=8 * total,                     # f32 read + f32 write, no padding
        ),
    )(params, x2)

    return out2.reshape(orig_shape)


def _reference(x, w1, b1, w2, b2):
    y = x * w1 + b1
    y = jnp.maximum(y, 0.0)
    return y * w2 + b2


if __name__ == "__main__":
    key = jax.random.PRNGKey(0)
    k_x, k_w1, k_b1, k_w2, k_b2 = jax.random.split(key, 5)

    # Small NCHW input consistent with Conv2d(1, 1, 1): batch=2, C=1, 16x16.
    x = jax.random.normal(k_x, (2, 1, 16, 16), dtype=jnp.float32)

    # Deterministic "PyTorch-like" init: Conv2d(1,1,1) has fan_in = 1, so
    # weights/biases are sampled uniformly in [-1, 1).
    w1 = jax.random.uniform(k_w1, (), minval=-1.0, maxval=1.0)
    b1 = jax.random.uniform(k_b1, (), minval=-1.0, maxval=1.0)
    w2 = jax.random.uniform(k_w2, (), minval=-1.0, maxval=1.0)
    b2 = jax.random.uniform(k_b2, (), minval=-1.0, maxval=1.0)

    out = jax.block_until_ready(scheduler_test_net(x, w1, b1, w2, b2))
    ref = _reference(x, w1, b1, w2, b2)
    assert out.shape == x.shape and out.dtype == x.dtype
    assert jnp.allclose(out, ref, atol=1e-5, rtol=1e-5)

    # Second check: a shape whose element count is not a multiple of 128,
    # exercising the zero-copy (N*H, W) fallback with a ragged last row-block.
    x_b = jax.random.normal(jax.random.PRNGKey(1), (3, 1, 20, 20),
                            dtype=jnp.float32)
    out_b = jax.block_until_ready(scheduler_test_net(x_b, w1, b1, w2, b2))
    ref_b = _reference(x_b, w1, b1, w2, b2)
    assert out_b.shape == x_b.shape
    assert jnp.allclose(out_b, ref_b, atol=1e-5, rtol=1e-5)

    print("KERNEL_OK")
</pallas_src>

<mosaic_0001>
module attributes {stable_mosaic.version = 11 : i64} {
  func.func @_scheduler_net_kernel(%arg0: i32, %arg1: memref<4xf32, #tpu.memory_space<smem>>, %arg2: memref<1x512xf32, #tpu.memory_space<vmem>>, %arg3: memref<1x512xf32, #tpu.memory_space<vmem>>) attributes {dimension_semantics = [#tpu.dimension_semantics<parallel>], iteration_bounds = array<i64: 1>, scalar_prefetch = 0 : i64, scratch_operands = 0 : i64, tpu.core_type = #tpu.core_type<tc>, window_params = [{transform_indices = @transform_0, window_bounds = array<i64: 4>}, {transform_indices = @transform_1, window_bounds = array<i64: 1, 512>}, {transform_indices = @transform_2, window_bounds = array<i64: 1, 512>}]} {
    %c0 = arith.constant 0 : index
    %0 = memref.load %arg1[%c0] : memref<4xf32, #tpu.memory_space<smem>>
    %c1 = arith.constant 1 : index
    %1 = memref.load %arg1[%c1] : memref<4xf32, #tpu.memory_space<smem>>
    %c2 = arith.constant 2 : index
    %2 = memref.load %arg1[%c2] : memref<4xf32, #tpu.memory_space<smem>>
    %c3 = arith.constant 3 : index
    %3 = memref.load %arg1[%c3] : memref<4xf32, #tpu.memory_space<smem>>
    %c0_0 = arith.constant 0 : index
    %c0_1 = arith.constant 0 : index
    %4 = vector.load %arg2[%c0_0, %c0_1] : memref<1x512xf32, #tpu.memory_space<vmem>>, vector<1x512xf32>
    %5 = vector.broadcast %0 : f32 to vector<1x512xf32>
    %6 = arith.mulf %4, %5 : vector<1x512xf32>
    %7 = vector.broadcast %1 : f32 to vector<1x512xf32>
    %8 = arith.addf %6, %7 : vector<1x512xf32>
    %cst = arith.constant 0.000000e+00 : f32
    %9 = vector.broadcast %cst : f32 to vector<1x512xf32>
    %10 = arith.maximumf %8, %9 : vector<1x512xf32>
    %11 = vector.broadcast %2 : f32 to vector<1x512xf32>
    %12 = arith.mulf %10, %11 : vector<1x512xf32>
    %13 = vector.broadcast %3 : f32 to vector<1x512xf32>
    %14 = arith.addf %12, %13 : vector<1x512xf32>
    %c0_2 = arith.constant 0 : index
    %c0_3 = arith.constant 0 : index
    %15 = vector.load %arg3[%c0_2, %c0_3] : memref<1x512xf32, #tpu.memory_space<vmem>>, vector<1x512xf32>
    tpu.vector_store %arg3[%c0_2, %c0_3], %14 {strides = array<i32>} : memref<1x512xf32, #tpu.memory_space<vmem>>, vector<1x512xf32>,
    return
  }
  func.func @transform_0(%arg0: i32) -> i32 {
    %c0_i32 = arith.constant 0 : i32
    %c0_i32_0 = arith.constant 0 : i32
    return %c0_i32 : i32
  }
  func.func @transform_1(%arg0: i32) -> (i32, i32) {
    %c0_i32 = arith.constant 0 : i32
    %c0_i32_0 = arith.constant 0 : i32
    return %arg0, %c0_i32 : i32, i32
  }
  func.func @transform_2(%arg0: i32) -> (i32, i32) {
    %c0_i32 = arith.constant 0 : i32
    %c0_i32_0 = arith.constant 0 : i32
    return %arg0, %c0_i32 : i32, i32
  }
}

</mosaic_0001>

<bundles_post_ra>
// kernel: tpu_custom_call.1
= control target key start
LH: loop header
LB: loop body
LE: loop exit
PB: predicated region body
PF: predicated region fallthrough
CT: control target
= control target key end

     0   :  { %7 = vsyncpa [#allocation5], 0  ;;  %s157_s0 = inlined_call_operand.hbm [shape: f32[4], index: 0, kind: input, shape index: {}]   ;;  %s158_s1 = inlined_call_operand.hbm [shape: f32[1,512], index: 1, kind: input, shape index: {}]   ;;  %s159_s2 = inlined_call_operand.hbm [shape: f32[1,512], index: 2, kind: output, shape index: {}]  }
   0x1   :  { %8 = vsyncpa [#allocation3], 0 }
   0x2   :  { %9 = vsyncpa [#allocation4], 0  ;;  %s130_s9 = smov [#allocation2]   ;;  %s131_s12 = smov [#allocation6]  }
   0x3   :  { %17 = dma.hbm_to_smem %s157_s0, 16, %s130_s9, [#allocation5]  }
   0x4   :  { %s24_s13 = sshll.u32 %s131_s12, 4  ;;  %s25_s13 = int_to_ptr.vmem [resolvable:$true] %s24_s13 }
   0x5   :  { %s92_s14 = scalar_lea.vmem %s25_s13, 64  ;;  %p97_p1 = scmp.lt.s32.totalorder %s25_s13, %s25_s13 }
   0x6   :  { %p93_p0 = scmp.ne.s32.totalorder %s25_s13, %s92_s14  ;;  %p98_p2 = scmp.lt.s32.totalorder %s92_s14, %s92_s14 }
   0x8   :  { %p99_p3 = por %p98_p2, %p97_p1 }
   0xa   :  { %p100_p4 = pnand %p99_p3, %p93_p0 }
   0xc   :  { %103 = shalt.err (!%p100_p4)
}
   0xd   :  { %27 = dma.hbm_to_vmem [thread:$0]  %s158_s1, 64, %s25_s13, [#allocation3]  }
   0xe   :  { %124 = dma.done.wait [#allocation5], 16  }
   0xf   :  { %125 = vsyncadd [#allocation5], 4294967280 }
  0x10   :  { %126 = dma.done.wait [#allocation3], 64  }
  0x11   :  { %127 = vsyncadd [#allocation3], 4294967232 }
  0x12   :  { %34 = sfence }
  0x13   :  { %s35_s0 = sld [smem:[#allocation2]]  ;;  %v39_v0 = vld [vmem:[#allocation6] sm:$0xf]  ;;  %v49_v6 = vlaneseq  ;;  %s132_s20 = smov [#allocation7]  }
  0x14   :  { %s70_s17 = sld [smem:[#allocation2 + $0x1]]  ;;  %s60_s1 = sshll.u32 %s132_s20, 4  ;;  %s61_s1 = int_to_ptr.vmem [resolvable:$true] %s60_s1 }
  0x15   :  { %s71_s18 = sld [smem:[#allocation2 + $0x2]]  ;;  %vm51_vm0 = vcmp.lt.s32.totalorder %v49_v6, 512  ;;  %s104_s21 = scalar_lea.vmem %s61_s1, 64 }
  0x16   :  { %s72_s19 = sld [smem:[#allocation2 + $0x3]]  ;;  %p105_p5 = scmp.ne.s32.totalorder %s61_s1, %s104_s21 }
  0x17   :  { %p109_p6 = scmp.lt.s32.totalorder %s61_s1, %s61_s1  ;;  %p110_p7 = scmp.lt.s32.totalorder %s104_s21, %s104_s21 }
  0x19   :  { %v40_v1 = vstv %s35_s0  ;;  %p111_p8 = por %p110_p7, %p109_p6 }
  0x1a   :  { %v41_v2 = vmul.f32 %v40_v1, %v39_v0  ;;  %v42_v3 = vstv %s70_s17 }
  0x1b   :  { %v45_v5 = vstv %s71_s18  ;;  %p112_p9 = pnand %p111_p8, %p105_p5 }
  0x1c   :  { %v43_v4 = vadd.f32 %v42_v3, %v41_v2  ;;  %v47_v8 = vstv %s72_s19 }
  0x1e   :  { %v44_v7 = vmax.f32 %v43_v4, 0.0 }
  0x20   :  { %v46_v9 = vmul.f32 %v45_v5, %v44_v7 }
  0x22   :  { %v48_v10 = vadd.f32 %v47_v8, %v46_v9 }
  0x24   :  { %53 = vst.msk [vmem:[#allocation7] sm:$0xf] %vm51_vm0, %v48_v10 }
  0x25   :  { %115 = shalt.err (!%p112_p9)
}
  0x26   :  { %63 = dma.vmem_to_hbm [thread:$0]  %s61_s1, 64, %s159_s2, [#allocation4]  }
  0x27   :  { %128 = dma.done.wait [#allocation4], 64  }
  0x28   :  { %129 = vsyncadd [#allocation4], 4294967232 }
  0x29   :  { %67 = vsyncpa [#allocation3], 1 }
  0x2a   :  { %68 = vsyncpa [#allocation4], 1 }
  0x2b   :  { %69 = vsyncpa [#allocation5], 1 }

</bundles_post_ra>
